<compile_context>
chip_gen: v7x
topology: tpu7x:2x2x1
jax: 0.10.0
libtpu: 0.0.40
codegen_flags: <defaults>
</compile_context>

<pallas_src>
import functools

import jax
import jax.numpy as jnp
from jax import lax
from jax.experimental import pallas as pl
from jax.experimental.pallas import tpu as pltpu


_LANE = 128                      # TPU lane width
_MAX_TM_DEFAULT = 2048           # rows per M tile (review: 1024-4096 range)
_VMEM_LIMIT = 32 * 1024 * 1024   # explicit scoped-VMEM budget; safe on v7x (64 MiB phys)


def _round_up(x, m):
    return (x + m - 1) // m * m


def _pick_tm(m_rows, max_tm):
    # Multiple of 16 (bf16 sublane packing), capped so double-buffered input +
    # output blocks stay a few MiB — well inside v7x's scoped VMEM.
    return min(max_tm, _round_up(m_rows, 16))


# ----------------------------------------------------------------------------
# Pallas kernels
# ----------------------------------------------------------------------------
def _mm_bias_relu6_kernel(x_ref, w_ref, b_ref, o_ref):
    """(tm,K)bf16 @ (K,N)bf16 -> f32 acc; +bias; ReLU6; store bf16."""
    acc = jnp.dot(x_ref[...], w_ref[...], preferred_element_type=jnp.float32)
    acc = jnp.clip(acc + b_ref[...], 0.0, 6.0)      # f32 epilogue (v5e: no bf16 VPU)
    o_ref[...] = acc.astype(o_ref.dtype)


def _fused_conv23_kernel(x_ref, w2_ref, b2_ref, w3_ref, b3_ref, o_ref):
    """conv2 (im2col matmul) + BN + ReLU6 fused with the 1x1 conv3 matmul."""
    h = jnp.dot(x_ref[...], w2_ref[...], preferred_element_type=jnp.float32)
    h = jnp.clip(h + b2_ref[...], 0.0, 6.0)         # f32 epilogue
    # conv3 is 1x1 -> second MXU matmul on the same VMEM tile (no HBM trip).
    h = h.astype(w3_ref.dtype)                      # bf16 for the MXU
    out = jnp.dot(h, w3_ref[...], preferred_element_type=jnp.float32)
    out = out + b3_ref[...]
    o_ref[...] = out.astype(o_ref.dtype)            # lane-dense (N=128) store


# ----------------------------------------------------------------------------
# pallas_call wrappers
# ----------------------------------------------------------------------------
def _conv_bn_relu6_call(col, w, b, *, max_tm=_MAX_TM_DEFAULT):
    """col:(M,K) bf16, w:(K,N) bf16, b:(N,) f32 -> (M,N) bf16."""
    M, K = col.shape
    N = w.shape[1]
    tm = _pick_tm(M, max_tm)
    grid = (pl.cdiv(M, tm),)

    cost = pl.CostEstimate(
        flops=2 * M * K * N,
        transcendentals=0,
        bytes_accessed=(M * K + K * N + M * N) * 2 + N * 4,
    )
    return pl.pallas_call(
        _mm_bias_relu6_kernel,
        out_shape=jax.ShapeDtypeStruct((M, N), jnp.bfloat16),
        grid=grid,
        in_specs=[
            pl.BlockSpec((tm, K), lambda i: (i, 0)),   # im2col row tile (pipelined)
            pl.BlockSpec((K, N), lambda i: (0, 0)),    # weights resident in VMEM
            pl.BlockSpec((1, N), lambda i: (0, 0)),    # folded-BN bias row
        ],
        out_specs=pl.BlockSpec((tm, N), lambda i: (i, 0)),
        compiler_params=pltpu.CompilerParams(
            dimension_semantics=("parallel",),          # shards over v7x's 2 TCs
            vmem_limit_bytes=_VMEM_LIMIT),
        cost_estimate=cost,
    )(col, w, b.reshape(1, N))


def _conv23_fused_call(col, w2, b2, w3, b3, *, max_tm=_MAX_TM_DEFAULT):
    """col:(M,K) bf16; w2:(K,N2) bf16; b2:(N2,) f32; w3:(N2,N3) bf16; b3:(N3,) f32.

    Returns (M, Np) f32 with Np = lane-padded max(N2,N3)=128; caller slices
    [:, :N3] exactly once at the very end.
    """
    M, K = col.shape
    N2 = w2.shape[1]
    N3 = w3.shape[1]
    Np = _round_up(max(N2, N3), _LANE)   # lane-dense intermediate + output

    # One-time zero padding of the tiny weights/biases to the lane width.
    w2p = jnp.zeros((K, Np), w2.dtype).at[:, :N2].set(w2)
    b2p = jnp.zeros((1, Np), jnp.float32).at[:, :N2].set(b2[None, :])
    w3p = jnp.zeros((Np, Np), w3.dtype).at[:N2, :N3].set(w3)
    b3p = jnp.zeros((1, Np), jnp.float32).at[:, :N3].set(b3[None, :])

    tm = _pick_tm(M, max_tm)
    grid = (pl.cdiv(M, tm),)

    cost = pl.CostEstimate(
        flops=2 * M * K * Np + 2 * M * Np * Np,
        transcendentals=0,
        bytes_accessed=(M * K + K * Np + Np * Np) * 2 + (M * Np + 2 * Np) * 4,
    )
    return pl.pallas_call(
        _fused_conv23_kernel,
        out_shape=jax.ShapeDtypeStruct((M, Np), jnp.float32),
        grid=grid,
        in_specs=[
            pl.BlockSpec((tm, K), lambda i: (i, 0)),    # im2col row tile (pipelined)
            pl.BlockSpec((K, Np), lambda i: (0, 0)),    # w2 resident
            pl.BlockSpec((1, Np), lambda i: (0, 0)),    # b2
            pl.BlockSpec((Np, Np), lambda i: (0, 0)),   # w3 (1x1 conv) resident
            pl.BlockSpec((1, Np), lambda i: (0, 0)),    # b3
        ],
        out_specs=pl.BlockSpec((tm, Np), lambda i: (i, 0)),
        compiler_params=pltpu.CompilerParams(
            dimension_semantics=("parallel",),
            vmem_limit_bytes=_VMEM_LIMIT),
        cost_estimate=cost,
    )(col, w2p, b2p, w3p, b3p)


# ----------------------------------------------------------------------------
# JAX glue: im2col, BN folding, parameter construction
# ----------------------------------------------------------------------------
def _im2col(x_nhwc, ksize, stride, pad):
    """Returns (B*Ho*Wo, ksize*ksize*C) with (kh, kw, C) column ordering."""
    B, H, W, C = x_nhwc.shape
    xp = jnp.pad(x_nhwc, ((0, 0), (pad, pad), (pad, pad), (0, 0)))
    Ho = (H + 2 * pad - ksize) // stride + 1
    Wo = (W + 2 * pad - ksize) // stride + 1
    cols = []
    for kh in range(ksize):
        for kw in range(ksize):
            patch = lax.slice(
                xp,
                (0, kh, kw, 0),
                (B, kh + (Ho - 1) * stride + 1, kw + (Wo - 1) * stride + 1, C),
                (1, stride, stride, 1),
            )  # (B, Ho, Wo, C)
            cols.append(patch)
    col = jnp.concatenate(cols, axis=-1)  # (B, Ho, Wo, k*k*C), (kh,kw,C) order
    return col.reshape(B * Ho * Wo, ksize * ksize * C), Ho, Wo


def _fold_bn(w_mat, conv_b, gamma, beta, mean, var, eps=1e-5):
    """Fold eval-mode BatchNorm into matmul weights/bias (f32)."""
    scale = gamma * lax.rsqrt(var + eps)          # (N,)
    w_eff = w_mat * scale[None, :]                # (K, N)
    b_eff = (conv_b - mean) * scale + beta        # (N,)
    return w_eff, b_eff


def _conv_weight_to_mat(w_oihw):
    """(Cout, Cin, kh, kw) -> (kh*kw*Cin, Cout) matching im2col ordering."""
    return jnp.transpose(w_oihw, (2, 3, 1, 0)).reshape(-1, w_oihw.shape[0])


def make_params(key, in_chans=3, inter_channel=32, out_channels=48):
    ks = jax.random.split(key, 10)

    def conv_init(k, cout, cin, kh, kw):
        fan_in = cin * kh * kw
        bound = 1.0 / jnp.sqrt(fan_in)
        kw_, kb_ = jax.random.split(k)
        w = jax.random.uniform(kw_, (cout, cin, kh, kw), jnp.float32, -bound, bound)
        b = jax.random.uniform(kb_, (cout,), jnp.float32, -bound, bound)
        return w, b

    def bn_init(k, c):
        k1, k2, k3, k4 = jax.random.split(k, 4)
        gamma = 1.0 + 0.1 * jax.random.normal(k1, (c,), jnp.float32)
        beta = 0.1 * jax.random.normal(k2, (c,), jnp.float32)
        mean = 0.1 * jax.random.normal(k3, (c,), jnp.float32)
        var = 0.5 + jnp.abs(jax.random.normal(k4, (c,), jnp.float32))
        return gamma, beta, mean, var

    p = {}
    p["conv1_w"], p["conv1_b"] = conv_init(ks[0], inter_channel, in_chans, 3, 3)
    p["bn1"] = bn_init(ks[1], inter_channel)
    p["conv2_w"], p["conv2_b"] = conv_init(ks[2], out_channels, inter_channel, 3, 3)
    p["bn2"] = bn_init(ks[3], out_channels)
    p["conv3_w"], p["conv3_b"] = conv_init(ks[4], out_channels, out_channels, 1, 1)
    return p


# ----------------------------------------------------------------------------
# Forward pass (mirrors PatchEmbedding.forward) — input/output NCHW f32
# ----------------------------------------------------------------------------
def patch_embedding_forward(x_nchw, p, *, max_tm=_MAX_TM_DEFAULT):
    B = x_nchw.shape[0]
    # NCHW -> NHWC, bf16 activations (halves HBM traffic into the MXU).
    x = jnp.transpose(x_nchw, (0, 2, 3, 1)).astype(jnp.bfloat16)

    # --- stage 1: conv1 (3x3, s2, p1) + BN + ReLU6 ---
    # TODO(synk): im2col is still materialized in HBM by XLA (~2.25x activation
    # bytes); a haloed-row manual-DMA kernel (pl.ANY + make_async_copy, 9 tap
    # dots in VMEM) would remove that traffic entirely.
    col, Ho, Wo = _im2col(x, 3, 2, 1)
    w1 = _conv_weight_to_mat(p["conv1_w"])
    w1, b1 = _fold_bn(w1, p["conv1_b"], *p["bn1"])
    y = _conv_bn_relu6_call(col, w1.astype(jnp.bfloat16), b1, max_tm=max_tm)
    x = y.reshape(B, Ho, Wo, -1)          # bf16, feeds stage-2 im2col directly

    # --- stage 2: conv2 (3x3, s2, p1) + BN + ReLU6 fused with conv3 (1x1) ---
    col, Ho, Wo = _im2col(x, 3, 2, 1)
    w2 = _conv_weight_to_mat(p["conv2_w"])
    w2, b2 = _fold_bn(w2, p["conv2_b"], *p["bn2"])
    w3 = _conv_weight_to_mat(p["conv3_w"])          # (C2, Cout)
    y = _conv23_fused_call(col, w2.astype(jnp.bfloat16), b2,
                           w3.astype(jnp.bfloat16), p["conv3_b"], max_tm=max_tm)

    n_out = p["conv3_w"].shape[0]
    # Single slice of the lane-padded channels, fused with the final transpose.
    y = y.reshape(B, Ho, Wo, -1)[..., :n_out]
    return jnp.transpose(y, (0, 3, 1, 2))           # NHWC -> NCHW, f32


# ----------------------------------------------------------------------------
# Pure-JAX f32 reference (lax.conv) for a correctness sanity check
# ----------------------------------------------------------------------------
def _reference_forward(x_nchw, p):
    def conv(x, w, b, stride, pad):
        y = lax.conv_general_dilated(
            x, w, (stride, stride), [(pad, pad), (pad, pad)],
            dimension_numbers=("NCHW", "OIHW", "NCHW"))
        return y + b[None, :, None, None]

    def bn(x, gamma, beta, mean, var, eps=1e-5):
        inv = lax.rsqrt(var + eps)
        return (x - mean[None, :, None, None]) * (gamma * inv)[None, :, None, None] \
            + beta[None, :, None, None]

    x = conv(x_nchw, p["conv1_w"], p["conv1_b"], 2, 1)
    x = jnp.clip(bn(x, *p["bn1"]), 0.0, 6.0)
    x = conv(x, p["conv2_w"], p["conv2_b"], 2, 1)
    x = jnp.clip(bn(x, *p["bn2"]), 0.0, 6.0)
    x = conv(x, p["conv3_w"], p["conv3_b"], 1, 0)
    return x


if __name__ == "__main__":
    key = jax.random.PRNGKey(0)
    k_in, k_par = jax.random.split(key)

    # Small example input consistent with the module: NCHW, in_chans=3.
    x = jax.random.normal(k_in, (2, 3, 16, 16), jnp.float32)
    params = make_params(k_par, in_chans=3, inter_channel=32, out_channels=48)

    fwd = jax.jit(patch_embedding_forward, static_argnames=("max_tm",))

    out = jax.block_until_ready(fwd(x, params))
    assert out.shape == (2, 48, 4, 4), out.shape

    # Exercise the multi-tile (grid > 1) pipelined path and check it matches.
    out_tiled = jax.block_until_ready(fwd(x, params, max_tm=64))
    assert jnp.allclose(out, out_tiled, atol=1e-5, rtol=1e-5), \
        float(jnp.max(jnp.abs(out - out_tiled)))

    # Check against the pure-f32 reference. Tolerance is relaxed because the
    # kernel feeds bf16 activations/weights to the MXU (f32 accumulate).
    ref = jax.block_until_ready(_reference_forward(x, params))
    assert jnp.allclose(out, ref, atol=1e-1, rtol=1e-1), \
        float(jnp.max(jnp.abs(out - ref)))

    print("KERNEL_OK")
</pallas_src>

<mosaic_0001>
module attributes {stable_mosaic.version = 11 : i64} {
  func.func @_mm_bias_relu6_kernel(%arg0: i32, %arg1: memref<128x27xbf16, #tpu.memory_space<vmem>>, %arg2: memref<27x32xbf16, #tpu.memory_space<vmem>>, %arg3: memref<1x32xf32, #tpu.memory_space<vmem>>, %arg4: memref<128x32xbf16, #tpu.memory_space<vmem>>) attributes {dimension_semantics = [#tpu.dimension_semantics<parallel>], iteration_bounds = array<i64: 1>, scalar_prefetch = 0 : i64, scratch_operands = 0 : i64, tpu.core_type = #tpu.core_type<tc>, window_params = [{transform_indices = @transform_0, window_bounds = array<i64: 128, 27>}, {pipeline_mode = #tpu.pipeline_mode<synchronous>, transform_indices = @transform_1, window_bounds = array<i64: 27, 32>}, {pipeline_mode = #tpu.pipeline_mode<synchronous>, transform_indices = @transform_2, window_bounds = array<i64: 1, 32>}, {transform_indices = @transform_3, window_bounds = array<i64: 128, 32>}]} {
    %c0 = arith.constant 0 : index
    %c0_0 = arith.constant 0 : index
    %0 = vector.load %arg1[%c0, %c0_0] : memref<128x27xbf16, #tpu.memory_space<vmem>>, vector<128x27xbf16>
    %c0_1 = arith.constant 0 : index
    %c0_2 = arith.constant 0 : index
    %1 = vector.load %arg2[%c0_1, %c0_2] : memref<27x32xbf16, #tpu.memory_space<vmem>>, vector<27x32xbf16>
    %cst = arith.constant dense<0.000000e+00> : vector<128x32xf32>
    %2 = tpu.matmul %0, %1, %cst {dimension_numbers = #tpu.dot_dimension_numbers<[1], [0], [0], [1], [0, 0, 1, 1], [], []>} : vector<128x27xbf16>, vector<27x32xbf16>, vector<128x32xf32> -> vector<128x32xf32>
    %c0_3 = arith.constant 0 : index
    %c0_4 = arith.constant 0 : index
    %3 = vector.load %arg3[%c0_3, %c0_4] : memref<1x32xf32, #tpu.memory_space<vmem>>, vector<1x32xf32>
    %4 = vector.broadcast %3 : vector<1x32xf32> to vector<128x32xf32>
    %5 = arith.addf %2, %4 : vector<128x32xf32>
    %cst_5 = arith.constant 0.000000e+00 : f32
    %cst_6 = arith.constant 6.000000e+00 : f32
    %6 = vector.broadcast %cst_5 : f32 to vector<128x32xf32>
    %7 = arith.maximumf %6, %5 : vector<128x32xf32>
    %8 = vector.broadcast %cst_6 : f32 to vector<128x32xf32>
    %9 = arith.minimumf %8, %7 : vector<128x32xf32>
    %10 = arith.truncf %9 : vector<128x32xf32> to vector<128x32xbf16>
    %c0_7 = arith.constant 0 : index
    %c0_8 = arith.constant 0 : index
    %11 = vector.load %arg4[%c0_7, %c0_8] : memref<128x32xbf16, #tpu.memory_space<vmem>>, vector<128x32xbf16>
    tpu.vector_store %arg4[%c0_7, %c0_8], %10 {strides = array<i32>} : memref<128x32xbf16, #tpu.memory_space<vmem>>, vector<128x32xbf16>,
    return
  }
  func.func @transform_0(%arg0: i32) -> (i32, i32) {
    %c0_i32 = arith.constant 0 : i32
    %c0_i32_0 = arith.constant 0 : i32
    return %arg0, %c0_i32 : i32, i32
  }
  func.func @transform_1(%arg0: i32) -> (i32, i32) {
    %c0_i32 = arith.constant 0 : i32
    %c0_i32_0 = arith.constant 0 : i32
    %c0_i32_1 = arith.constant 0 : i32
    return %c0_i32, %c0_i32_0 : i32, i32
  }
  func.func @transform_2(%arg0: i32) -> (i32, i32) {
    %c0_i32 = arith.constant 0 : i32
    %c0_i32_0 = arith.constant 0 : i32
    %c0_i32_1 = arith.constant 0 : i32
    return %c0_i32, %c0_i32_0 : i32, i32
  }
  func.func @transform_3(%arg0: i32) -> (i32, i32) {
    %c0_i32 = arith.constant 0 : i32
    %c0_i32_0 = arith.constant 0 : i32
    return %arg0, %c0_i32 : i32, i32
  }
}

module attributes {stable_mosaic.version = 11 : i64} {
  func.func @_fused_conv23_kernel(%arg0: i32, %arg1: memref<32x288xbf16, #tpu.memory_space<vmem>>, %arg2: memref<288x128xbf16, #tpu.memory_space<vmem>>, %arg3: memref<1x128xf32, #tpu.memory_space<vmem>>, %arg4: memref<128x128xbf16, #tpu.memory_space<vmem>>, %arg5: memref<1x128xf32, #tpu.memory_space<vmem>>, %arg6: memref<32x128xf32, #tpu.memory_space<vmem>>) attributes {dimension_semantics = [#tpu.dimension_semantics<parallel>], iteration_bounds = array<i64: 1>, scalar_prefetch = 0 : i64, scratch_operands = 0 : i64, tpu.core_type = #tpu.core_type<tc>, window_params = [{transform_indices = @transform_0, window_bounds = array<i64: 32, 288>}, {pipeline_mode = #tpu.pipeline_mode<synchronous>, transform_indices = @transform_1, window_bounds = array<i64: 288, 128>}, {pipeline_mode = #tpu.pipeline_mode<synchronous>, transform_indices = @transform_2, window_bounds = array<i64: 1, 128>}, {pipeline_mode = #tpu.pipeline_mode<synchronous>, transform_indices = @transform_3, window_bounds = array<i64: 128, 128>}, {pipeline_mode = #tpu.pipeline_mode<synchronous>, transform_indices = @transform_4, window_bounds = array<i64: 1, 128>}, {transform_indices = @transform_5, window_bounds = array<i64: 32, 128>}]} {
    %c0 = arith.constant 0 : index
    %c0_0 = arith.constant 0 : index
    %0 = vector.load %arg1[%c0, %c0_0] : memref<32x288xbf16, #tpu.memory_space<vmem>>, vector<32x288xbf16>
    %c0_1 = arith.constant 0 : index
    %c0_2 = arith.constant 0 : index
    %1 = vector.load %arg2[%c0_1, %c0_2] : memref<288x128xbf16, #tpu.memory_space<vmem>>, vector<288x128xbf16>
    %cst = arith.constant dense<0.000000e+00> : vector<32x128xf32>
    %2 = tpu.matmul %0, %1, %cst {dimension_numbers = #tpu.dot_dimension_numbers<[1], [0], [0], [1], [0, 0, 1, 1], [], []>} : vector<32x288xbf16>, vector<288x128xbf16>, vector<32x128xf32> -> vector<32x128xf32>
    %c0_3 = arith.constant 0 : index
    %c0_4 = arith.constant 0 : index
    %3 = vector.load %arg3[%c0_3, %c0_4] : memref<1x128xf32, #tpu.memory_space<vmem>>, vector<1x128xf32>
    %4 = vector.broadcast %3 : vector<1x128xf32> to vector<32x128xf32>
    %5 = arith.addf %2, %4 : vector<32x128xf32>
    %cst_5 = arith.constant 0.000000e+00 : f32
    %cst_6 = arith.constant 6.000000e+00 : f32
    %6 = vector.broadcast %cst_5 : f32 to vector<32x128xf32>
    %7 = arith.maximumf %6, %5 : vector<32x128xf32>
    %8 = vector.broadcast %cst_6 : f32 to vector<32x128xf32>
    %9 = arith.minimumf %8, %7 : vector<32x128xf32>
    %10 = arith.truncf %9 : vector<32x128xf32> to vector<32x128xbf16>
    %c0_7 = arith.constant 0 : index
    %c0_8 = arith.constant 0 : index
    %11 = vector.load %arg4[%c0_7, %c0_8] : memref<128x128xbf16, #tpu.memory_space<vmem>>, vector<128x128xbf16>
    %cst_9 = arith.constant dense<0.000000e+00> : vector<32x128xf32>
    %12 = tpu.matmul %10, %11, %cst_9 {dimension_numbers = #tpu.dot_dimension_numbers<[1], [0], [0], [1], [0, 0, 1, 1], [], []>} : vector<32x128xbf16>, vector<128x128xbf16>, vector<32x128xf32> -> vector<32x128xf32>
    %c0_10 = arith.constant 0 : index
    %c0_11 = arith.constant 0 : index
    %13 = vector.load %arg5[%c0_10, %c0_11] : memref<1x128xf32, #tpu.memory_space<vmem>>, vector<1x128xf32>
    %14 = vector.broadcast %13 : vector<1x128xf32> to vector<32x128xf32>
    %15 = arith.addf %12, %14 : vector<32x128xf32>
    %c0_12 = arith.constant 0 : index
    %c0_13 = arith.constant 0 : index
    %16 = vector.load %arg6[%c0_12, %c0_13] : memref<32x128xf32, #tpu.memory_space<vmem>>, vector<32x128xf32>
    tpu.vector_store %arg6[%c0_12, %c0_13], %15 {strides = array<i32>} : memref<32x128xf32, #tpu.memory_space<vmem>>, vector<32x128xf32>,
    return
  }
  func.func @transform_0(%arg0: i32) -> (i32, i32) {
    %c0_i32 = arith.constant 0 : i32
    %c0_i32_0 = arith.constant 0 : i32
    return %arg0, %c0_i32 : i32, i32
  }
  func.func @transform_1(%arg0: i32) -> (i32, i32) {
    %c0_i32 = arith.constant 0 : i32
    %c0_i32_0 = arith.constant 0 : i32
    %c0_i32_1 = arith.constant 0 : i32
    return %c0_i32, %c0_i32_0 : i32, i32
  }
  func.func @transform_2(%arg0: i32) -> (i32, i32) {
    %c0_i32 = arith.constant 0 : i32
    %c0_i32_0 = arith.constant 0 : i32
    %c0_i32_1 = arith.constant 0 : i32
    return %c0_i32, %c0_i32_0 : i32, i32
  }
  func.func @transform_3(%arg0: i32) -> (i32, i32) {
    %c0_i32 = arith.constant 0 : i32
    %c0_i32_0 = arith.constant 0 : i32
    %c0_i32_1 = arith.constant 0 : i32
    return %c0_i32, %c0_i32_0 : i32, i32
  }
  func.func @transform_4(%arg0: i32) -> (i32, i32) {
    %c0_i32 = arith.constant 0 : i32
    %c0_i32_0 = arith.constant 0 : i32
    %c0_i32_1 = arith.constant 0 : i32
    return %c0_i32, %c0_i32_0 : i32, i32
  }
  func.func @transform_5(%arg0: i32) -> (i32, i32) {
    %c0_i32 = arith.constant 0 : i32
    %c0_i32_0 = arith.constant 0 : i32
    return %arg0, %c0_i32 : i32, i32
  }
}

</mosaic_0001>

<bundles_post_ra>
// kernel: patch_embedding_forward.2
= control target key start
LH: loop header
LB: loop body
LE: loop exit
PB: predicated region body
PF: predicated region fallthrough
CT: control target
= control target key end

     0   :  { %vm118_vm0 = vcmask 1044480   ;;  %vm119_vm1 = vcmask 1045504   ;;  %vm93_vm2 = vcmask 220160   ;;  %v435_v1 = vmov 65535   ;;  %s579_s1 = inlined_call_operand.vmem [shape: bf16[27,32], index: 1, kind: input, shape index: {}]   ;;  %s580_s0 = inlined_call_operand.vmem [shape: bf16[128,27], index: 0, kind: input, shape index: {}]   ;;  %s581_s2 = inlined_call_operand.vmem [shape: f32[1,32], index: 2, kind: input, shape index: {}]   ;;  %s582_s3 = inlined_call_operand.vmem [shape: bf16[128,32], index: 3, kind: output, shape index: {}]  }
   0x1   :  { %v425_v0 = vld [vmem:[%s579_s1] sm:$0xff]   ;;  %v120_v2 = vsel %vm118_vm0, 4294967295, %v435_v1  ;;  %v426_v3 = vld [vmem:[%s579_s1 + $0x8] sm:$0x3f]   ;;  %v431_v10 = vld [vmem:[%s580_s0 + $0x10] sm:$0xff]   ;;  %vm318_vm3 = vcmask 257024  }
   0x2   :  { %400 = vmatprep.subr.bf16.mxu0 %v425_v0  ;;  %420 = vmatprep.subr.bf16.mxu1 %v425_v0  ;;  %v121_v4 = vsel %vm119_vm1, %v120_v2, 0  ;;  %v427_v5 = vld [vmem:[%s580_s0] sm:$0xff]   ;;  %v429_v8 = vld [vmem:[%s580_s0 + $0x8] sm:$0xff]   ;;  %v432_v11 = vld [vmem:[%s580_s0 + $0x30] sm:$0xff]  }
   0x3   :  { %401 = vmatpush3.bf16.msra.mxu0 %v425_v0  ;;  %422 = vmatpush3.bf16.msra.mxu1 %v425_v0  ;;  %v123_v6 = vand.u32 %v426_v3, %v121_v4  ;;  %v428_v7 = vld [vmem:[%s580_s0 + $0x20] sm:$0xff]   ;;  %v430_v9 = vld [vmem:[%s580_s0 + $0x28] sm:$0xff]   ;;  %v433_v12 = vld [vmem:[%s580_s0 + $0x18] sm:$0xff]  }
   0x4   :  { %404 = vmatprep.mubr.msk.bf16.mxu0 %vm93_vm2, %v427_v5  ;;  %412 = vmatprep.mubr.msk.bf16.mxu1 %vm93_vm2, %v428_v7  ;;  %v434_v13 = vld [vmem:[%s580_s0 + $0x38] sm:$0xff]   ;;  %v497_v14 = vld [vmem:[%s581_s2] ss:$0 sm:$0xff] }
   0x5   :  { %402 = vmatprep.subr.bf16.mxu0 %v123_v6  ;;  %421 = vmatprep.subr.bf16.mxu1 %v123_v6 }
   0x7   :  { %403 = vmatpush3.bf16.msra.mxu0 %v123_v6  ;;  %423 = vmatpush3.bf16.msra.mxu1 %v123_v6 }
   0xa   :  { %405 = vmatmul.mubr.msk.bf16.vlgmr.msra.gmra.mrb[0].mxu0 %vm93_vm2, %v429_v8  ;;  %413 = vmatmul.mubr.msk.bf16.vlgmr.msra.gmra.mrb[0].mxu1 %vm93_vm2, %v430_v9 }
   0xb   :  { %408 = vmatprep.mubr.msk.bf16.mxu0 %vm93_vm2, %v431_v10  ;;  %416 = vmatprep.mubr.msk.bf16.mxu1 %vm93_vm2, %v432_v11 }
  0x12   :  { %409 = vmatmul.mubr.msk.bf16.gmra.mrb[4].mxu0 %vm93_vm2, %v433_v12  ;;  %417 = vmatmul.mubr.msk.bf16.gmra.mrb[4].mxu1 %vm93_vm2, %v434_v13 }
  0xdd   :  { %v406_v15 = vpop.f32.mrb[0].mxu0  ;;  %v414_v16 = vpop.f32.mrb[0].mxu1 }
  0xde   :  { %v168_v17 = vadd.f32 %v406_v15, %v497_v14  ;;  %v200_v18 = vadd.f32 %v414_v16, %v497_v14  ;;  %v159_v19 = vpop.f32.mrb[1].mxu0  ;;  %v191_v20 = vpop.f32.mrb[1].mxu1 }
  0xdf   :  { %v160_v21 = vadd.f32 %v497_v14, %v159_v19  ;;  %v192_v22 = vadd.f32 %v497_v14, %v191_v20  ;;  %v407_v23 = vpop.f32.mrb[2].mxu0  ;;  %v415_v24 = vpop.f32.mrb[2].mxu1 }
  0xe0   :  { %v224_v25 = vmax.f32 %v168_v17, 0.0  ;;  %v232_v26 = vmax.f32 %v200_v18, 0.0  ;;  %v171_v27 = vadd.f32 %v407_v23, %v497_v14  ;;  %v203_v28 = vadd.f32 %v415_v24, %v497_v14  ;;  %v162_v29 = vpop.f32.mrb[3].mxu0  ;;  %v194_v30 = vpop.f32.mrb[3].mxu1 }
  0xe1   :  { %v222_v31 = vmax.f32 %v160_v21, 0.0  ;;  %v230_v32 = vmax.f32 %v192_v22, 0.0  ;;  %v163_v33 = vadd.f32 %v497_v14, %v162_v29  ;;  %v195_v34 = vadd.f32 %v497_v14, %v194_v30 }
  0xe2   :  { %v240_v35 = vmin.f32 %v224_v25, 6.0  ;;  %v248_v36 = vmin.f32 %v232_v26, 6.0  ;;  %v225_v37 = vmax.f32 %v171_v27, 0.0  ;;  %v233_v38 = vmax.f32 %v203_v28, 0.0 }
  0xe3   :  { %v238_v39 = vmin.f32 %v222_v31, 6.0  ;;  %v246_v40 = vmin.f32 %v230_v32, 6.0  ;;  %v223_v41 = vmax.f32 %v163_v33, 0.0  ;;  %v231_v42 = vmax.f32 %v195_v34, 0.0 }
  0xe4   :  { %v376_v43 = vpack.c.bf16 %v240_v35, %v240_v35  ;;  %v384_v44 = vpack.c.bf16 %v248_v36, %v248_v36  ;;  %v241_v45 = vmin.f32 %v225_v37, 6.0  ;;  %v249_v46 = vmin.f32 %v233_v38, 6.0 }
  0xe5   :  { %v374_v47 = vpack.c.bf16 %v238_v39, %v238_v39  ;;  %v382_v48 = vpack.c.bf16 %v246_v40, %v246_v40  ;;  %v239_v49 = vmin.f32 %v223_v41, 6.0  ;;  %v247_v50 = vmin.f32 %v231_v42, 6.0  ;;  %v410_v51 = vpop.f32.mrb[4].mxu0  ;;  %v418_v52 = vpop.f32.mrb[4].mxu1 }
  0xe6   :  { %321 = vst.msk [vmem:[%s582_s3 + $0x8] sm:$0xf] %vm318_vm3, %v376_v43  ;;  %329 = vst.msk [vmem:[%s582_s3 + $0x28] sm:$0xf] %vm318_vm3, %v384_v44  ;;  %v377_v53 = vpack.c.bf16 %v241_v45, %v241_v45  ;;  %v385_v54 = vpack.c.bf16 %v249_v46, %v249_v46  ;;  %v184_v55 = vadd.f32 %v410_v51, %v497_v14  ;;  %v175_v57 = vpop.f32.mrb[5].mxu0  ;;  %v207_v58 = vpop.f32.mrb[5].mxu1 }
  0xe7   :  { %v216_v56 = vadd.f32 %v418_v52, %v497_v14  ;;  %319 = vst.msk [vmem:[%s582_s3] sm:$0xf] %vm318_vm3, %v374_v47  ;;  %327 = vst.msk [vmem:[%s582_s3 + $0x20] sm:$0xf] %vm318_vm3, %v382_v48  ;;  %v375_v59 = vpack.c.bf16 %v239_v49, %v239_v49  ;;  %v383_v60 = vpack.c.bf16 %v247_v50, %v247_v50  ;;  %v411_v63 = vpop.f32.mrb[6].mxu0  ;;  %v419_v0 = vpop.f32.mrb[6].mxu1 }
  0xe8   :  { %v176_v61 = vadd.f32 %v497_v14, %v175_v57  ;;  %v208_v62 = vadd.f32 %v497_v14, %v207_v58  ;;  %322 = vst.msk [vmem:[%s582_s3 + $0xc] sm:$0xf] %vm318_vm3, %v377_v53  ;;  %330 = vst.msk [vmem:[%s582_s3 + $0x2c] sm:$0xf] %vm318_vm3, %v385_v54  ;;  %v228_v1 = vmax.f32 %v184_v55, 0.0  ;;  %v187_v3 = vadd.f32 %v411_v63, %v497_v14  ;;  %v178_v5 = vpop.f32.mrb[7].mxu0 }
  0xe9   :  { %v236_v2 = vmax.f32 %v216_v56, 0.0  ;;  %v219_v4 = vadd.f32 %v419_v0, %v497_v14  ;;  %v210_v6 = vpop.f32.mrb[7].mxu1  ;;  %320 = vst.msk [vmem:[%s582_s3 + $0x4] sm:$0xf] %vm318_vm3, %v375_v59  ;;  %328 = vst.msk [vmem:[%s582_s3 + $0x24] sm:$0xf] %vm318_vm3, %v383_v60  ;;  %v179_v9 = vadd.f32 %v497_v14, %v178_v5 }
  0xea   :  { %v226_v7 = vmax.f32 %v176_v61, 0.0  ;;  %v234_v8 = vmax.f32 %v208_v62, 0.0  ;;  %v211_v10 = vadd.f32 %v497_v14, %v210_v6  ;;  %v244_v11 = vmin.f32 %v228_v1, 6.0 }
  0xeb   :  { %v252_v12 = vmin.f32 %v236_v2, 6.0  ;;  %v229_v13 = vmax.f32 %v187_v3, 0.0  ;;  %v237_v15 = vmax.f32 %v219_v4, 0.0  ;;  %v227_v18 = vmax.f32 %v179_v9, 0.0 }
  0xec   :  { %v242_v16 = vmin.f32 %v226_v7, 6.0  ;;  %v250_v17 = vmin.f32 %v234_v8, 6.0  ;;  %v235_v19 = vmax.f32 %v211_v10, 0.0  ;;  %v380_v20 = vpack.c.bf16 %v244_v11, %v244_v11 }
  0xed   :  { %v388_v21 = vpack.c.bf16 %v252_v12, %v252_v12  ;;  %v245_v22 = vmin.f32 %v229_v13, 6.0  ;;  %v253_v23 = vmin.f32 %v237_v15, 6.0  ;;  %v243_v26 = vmin.f32 %v227_v18, 6.0 }
  0xee   :  { %v378_v24 = vpack.c.bf16 %v242_v16, %v242_v16  ;;  %v386_v25 = vpack.c.bf16 %v250_v17, %v250_v17  ;;  %v251_v27 = vmin.f32 %v235_v19, 6.0  ;;  %325 = vst.msk [vmem:[%s582_s3 + $0x18] sm:$0xf] %vm318_vm3, %v380_v20 }
  0xef   :  { %333 = vst.msk [vmem:[%s582_s3 + $0x38] sm:$0xf] %vm318_vm3, %v388_v21  ;;  %v381_v14 = vpack.c.bf16 %v245_v22, %v245_v22  ;;  %v389_v28 = vpack.c.bf16 %v253_v23, %v253_v23  ;;  %v379_v29 = vpack.c.bf16 %v243_v26, %v243_v26 }
  0xf0   :  { %323 = vst.msk [vmem:[%s582_s3 + $0x10] sm:$0xf] %vm318_vm3, %v378_v24  ;;  %331 = vst.msk [vmem:[%s582_s3 + $0x30] sm:$0xf] %vm318_vm3, %v386_v25  ;;  %v387_v30 = vpack.c.bf16 %v251_v27, %v251_v27 }
  0xf1   :  { %326 = vst.msk [vmem:[%s582_s3 + $0x1c] sm:$0xf] %vm318_vm3, %v381_v14  ;;  %334 = vst.msk [vmem:[%s582_s3 + $0x3c] sm:$0xf] %vm318_vm3, %v389_v28 }
  0xf2   :  { %324 = vst.msk [vmem:[%s582_s3 + $0x14] sm:$0xf] %vm318_vm3, %v379_v29  ;;  %332 = vst.msk [vmem:[%s582_s3 + $0x34] sm:$0xf] %vm318_vm3, %v387_v30 }

// kernel: patch_embedding_forward.3
= control target key start
LH: loop header
LB: loop body
LE: loop exit
PB: predicated region body
PF: predicated region fallthrough
CT: control target
= control target key end

     0   :  { %vm210_vm0 = vcmask 261120   ;;  %s739_s1 = inlined_call_operand.vmem [shape: bf16[288,128], index: 1, kind: input, shape index: {}]   ;;  %s740_s0 = inlined_call_operand.vmem [shape: bf16[32,288], index: 0, kind: input, shape index: {}]   ;;  %s741_s3 = inlined_call_operand.vmem [shape: bf16[128,128], index: 3, kind: input, shape index: {}]   ;;  %s742_s2 = inlined_call_operand.vmem [shape: f32[1,128], index: 2, kind: input, shape index: {}]   ;;  %s743_s4 = inlined_call_operand.vmem [shape: f32[1,128], index: 4, kind: input, shape index: {}]   ;;  %s744_s5 = inlined_call_operand.vmem [shape: f32[32,128], index: 5, kind: output, shape index: {}]  }
   0x1   :  { %v559_v0 = vld [vmem:[%s739_s1 + $0x40] sm:$0xff]   ;;  %v561_v2 = vld [vmem:[%s739_s1 + $0x48] sm:$0xff]   ;;  %v563_v4 = vld [vmem:[%s739_s1 + $0x50] sm:$0xff]  }
   0x2   :  { %v560_v1 = vld [vmem:[%s739_s1] sm:$0xff]   ;;  %489 = vmatprep.subr.bf16.mxu0 %v559_v0  ;;  %v562_v3 = vld [vmem:[%s739_s1 + $0x8] sm:$0xff]   ;;  %v564_v5 = vld [vmem:[%s739_s1 + $0x10] sm:$0xff]  }
   0x3   :  { %490 = vmatpush3.bf16.msra.mxu0 %v560_v1  ;;  %v565_v6 = vld [vmem:[%s739_s1 + $0x58] sm:$0xff]   ;;  %v567_v8 = vld [vmem:[%s739_s1 + $0x60] sm:$0xff]   ;;  %v569_v11 = vld [vmem:[%s739_s1 + $0x68] sm:$0xff]  }
   0x4   :  { %491 = vmatprep.subr.bf16.mxu0 %v561_v2  ;;  %v566_v7 = vld [vmem:[%s739_s1 + $0x18] sm:$0xff]   ;;  %v568_v9 = vld [vmem:[%s739_s1 + $0x20] sm:$0xff]   ;;  %v570_v12 = vld [vmem:[%s739_s1 + $0x28] sm:$0xff]  }
   0x5   :  { %v574_v10 = vld [vmem:[%s739_s1 + $0x80] sm:$0xff]   ;;  %v571_v13 = vld [vmem:[%s739_s1 + $0x70] sm:$0xff]   ;;  %v579_v15 = vld [vmem:[%s739_s1 + $0x88] sm:$0xff]  }
   0x6   :  { %531 = vmatprep.subr.bf16.mxu1 %v574_v10  ;;  %v578_v14 = vld [vmem:[%s740_s0 + $0x4] ss:$12 sps:$4 sm:$0xff]   ;;  %v580_v16 = vld [vmem:[%s740_s0 + $0x8] ss:$12 sps:$4 sm:$0xff]   ;;  %v581_v17 = vld [vmem:[%s740_s0 + $0x20] ss:$12 sps:$4 sm:$0xff]  }
   0x7   :  { %492 = vmatpush3.bf16.msra.mxu0 %v562_v3  ;;  %532 = vmatpush3.bf16.msra.mxu1 %v574_v10  ;;  %v572_v18 = vld [vmem:[%s739_s1 + $0x30] sm:$0xff]   ;;  %v573_v19 = vld [vmem:[%s739_s1 + $0x78] sm:$0xff]   ;;  %v585_v20 = vld [vmem:[%s741_s3] sm:$0xff]  }
   0x8   :  { %493 = vmatprep.subr.bf16.mxu0 %v563_v4  ;;  %249 = vmatprep.mubr.bf16.mxu0 %v578_v14  ;;  %v586_v21 = vld [vmem:[%s741_s3 + $0x8] sm:$0xff]   ;;  %v575_v22 = vld [vmem:[%s739_s1 + $0x38] sm:$0xff]   ;;  %v587_v26 = vld [vmem:[%s741_s3 + $0x10] sm:$0xff]  }
   0x9   :  { %533 = vmatprep.subr.bf16.mxu1 %v579_v15  ;;  %535 = vmatprep.mubr.msk.bf16.mxu1 %vm210_vm0, %v580_v16  ;;  %v576_v23 = vld [vmem:[%s740_s0] ss:$12 sps:$4 sm:$0xff]   ;;  %v582_v24 = vld [vmem:[%s740_s0 + $0x1c] ss:$12 sps:$4 sm:$0xff]   ;;  %v584_v25 = vld [vmem:[%s740_s0 + $0x18] ss:$12 sps:$4 sm:$0xff]  }
   0xa   :  { %v588_v27 = vld [vmem:[%s741_s3 + $0x18] sm:$0xff]   ;;  %v589_v28 = vld [vmem:[%s741_s3 + $0x20] sm:$0xff]   ;;  %v590_v29 = vld [vmem:[%s741_s3 + $0x28] sm:$0xff]  }
   0xb   :  { %494 = vmatpush3.bf16.msra.mxu0 %v564_v5  ;;  %534 = vmatpush3.bf16.msra.mxu1 %v579_v15  ;;  %v591_v30 = vld [vmem:[%s741_s3 + $0x30] sm:$0xff]   ;;  %v592_v31 = vld [vmem:[%s741_s3 + $0x38] sm:$0xff]   ;;  %v453_v38 = vld [vmem:[%s742_s2] ss:$0 sm:$0xff] }
   0xc   :  { %495 = vmatprep.subr.bf16.mxu0 %v565_v6  ;;  %539 = vmatprep.subr.bf16.mxu1 %v585_v20  ;;  %v480_v3 = vld [vmem:[%s743_s4] ss:$0 sm:$0xff] }
   0xe   :  { %536 = vmatmul.mubr.msk.bf16.vlgmr.msra.gmra.mrb[0].mxu1 %vm210_vm0, %v581_v17 }
   0xf   :  { %496 = vmatpush3.bf16.msra.mxu0 %v566_v7  ;;  %540 = vmatpush3.bf16.msra.mxu1 %v585_v20 }
  0x10   :  { %497 = vmatprep.subr.bf16.mxu0 %v567_v8  ;;  %541 = vmatprep.subr.bf16.mxu1 %v586_v21 }
  0x13   :  { %498 = vmatpush3.bf16.msra.mxu0 %v568_v9  ;;  %542 = vmatpush3.bf16.msra.mxu1 %v586_v21 }
  0x14   :  { %499 = vmatprep.subr.bf16.mxu0 %v569_v11  ;;  %543 = vmatprep.subr.bf16.mxu1 %v587_v26 }
  0x17   :  { %500 = vmatpush3.bf16.msra.mxu0 %v570_v12  ;;  %544 = vmatpush3.bf16.msra.mxu1 %v587_v26 }
  0x18   :  { %501 = vmatprep.subr.bf16.mxu0 %v571_v13  ;;  %545 = vmatprep.subr.bf16.mxu1 %v588_v27 }
  0x1b   :  { %502 = vmatpush3.bf16.msra.mxu0 %v572_v18  ;;  %546 = vmatpush3.bf16.msra.mxu1 %v588_v27 }
  0x1c   :  { %503 = vmatprep.subr.bf16.mxu0 %v573_v19  ;;  %547 = vmatprep.subr.bf16.mxu1 %v589_v28 }
  0x1f   :  { %504 = vmatpush3.bf16.msra.mxu0 %v575_v22  ;;  %548 = vmatpush3.bf16.msra.mxu1 %v589_v28 }
  0x20   :  { %549 = vmatprep.subr.bf16.mxu1 %v590_v29 }
  0x22   :  { %250 = vmatmul.mubr.bf16.vlgmr.msra.gmra.mrb[0].mxu0 %v576_v23 }
  0x23   :  { %257 = vmatprep.mubr.bf16.mxu0 %v582_v24  ;;  %550 = vmatpush3.bf16.msra.mxu1 %v590_v29 }
  0x24   :  { %551 = vmatprep.subr.bf16.mxu1 %v591_v30 }
  0x27   :  { %552 = vmatpush3.bf16.msra.mxu1 %v591_v30 }
  0x28   :  { %553 = vmatprep.subr.bf16.mxu1 %v592_v31 }
  0x2a   :  { %258 = vmatmul.mubr.bf16.gmra.mrb[4].mxu0 %v584_v25 }
  0x2b   :  { %554 = vmatpush3.bf16.msra.mxu1 %v592_v31 }
  0xe1   :  { %v537_v32 = vpop.f32.mrb[0].mxu1 }
  0xe2   :  { %v300_v33 = vpop.f32.mrb[1].mxu1 }
  0xe3   :  { %v538_v34 = vpop.f32.mrb[2].mxu1 }
  0xe4   :  { %v303_v35 = vpop.f32.mrb[3].mxu1 }
  0xf5   :  { %v505_v36 = vpop.f32.mrb[0].mxu0 }
  0xf6   :  { %v506_v37 = vpop.f32.mrb[1].mxu0 }
  0xf7   :  { %v507_v39 = vadd.f32 %v506_v37, %v505_v36  ;;  %v508_v40 = vpop.f32.mrb[2].mxu0 }
  0xf8   :  { %v509_v41 = vpop.f32.mrb[3].mxu0 }
  0xf9   :  { %v510_v42 = vadd.f32 %v509_v41, %v508_v40  ;;  %v252_v43 = vadd.f32 %v507_v39, %v453_v38 }
  0xfb   :  { %v301_v44 = vadd.f32 %v300_v33, %v252_v43  ;;  %v255_v45 = vadd.f32 %v510_v42, %v453_v38 }
  0xfd   :  { %v315_v46 = vmax.f32 %v301_v44, 0.0  ;;  %v304_v47 = vadd.f32 %v303_v35, %v255_v45  ;;  %v511_v48 = vpop.f32.mrb[4].mxu0 }
  0xfe   :  { %v512_v49 = vpop.f32.mrb[5].mxu0 }
  0xff   :  { %v316_v50 = vmax.f32 %v304_v47, 0.0  ;;  %v513_v51 = vadd.f32 %v512_v49, %v511_v48  ;;  %v514_v52 = vpop.f32.mrb[6].mxu0  ;;  %v319_v54 = vmin.f32 %v315_v46, 6.0 }
 0x100   :  { %v515_v53 = vpop.f32.mrb[7].mxu0 }
 0x101   :  { %v320_v55 = vmin.f32 %v316_v50, 6.0  ;;  %v260_v56 = vadd.f32 %v513_v51, %v453_v38  ;;  %v516_v57 = vadd.f32 %v515_v53, %v514_v52 }
 0x103   :  { %v323_v58 = vpack.c.bf16 %v320_v55, %v319_v54  ;;  %v309_v59 = vadd.f32 %v537_v32, %v260_v56  ;;  %v263_v60 = vadd.f32 %v516_v57, %v453_v38 }
 0x105   :  { %v317_v61 = vmax.f32 %v309_v59, 0.0  ;;  %v312_v62 = vadd.f32 %v538_v34, %v263_v60  ;;  %555 = vmatprep.mubr.bf16.mxu1 %v323_v58 }
 0x107   :  { %v318_v63 = vmax.f32 %v312_v62, 0.0  ;;  %v321_v0 = vmin.f32 %v317_v61, 6.0 }
 0x109   :  { %v322_v1 = vmin.f32 %v318_v63, 6.0 }
 0x10b   :  { %v324_v2 = vpack.c.bf16 %v322_v1, %v321_v0 }
 0x10d   :  { %556 = vmatmul.mubr.bf16.vlgmr.msra.gmra.mrb[4].mxu1 %v324_v2 }
 0x1e0   :  { %v557_v4 = vpop.f32.mrb[4].mxu1 }
 0x1e1   :  { %v439_v5 = vadd.f32 %v557_v4, %v480_v3  ;;  %v430_v6 = vpop.f32.mrb[5].mxu1 }
 0x1e2   :  { %v431_v7 = vadd.f32 %v480_v3, %v430_v6  ;;  %v558_v8 = vpop.f32.mrb[6].mxu1 }
 0x1e3   :  { %447 = vst [vmem:[%s744_s5 + $0x10] sm:$0xff] %v439_v5  ;;  %v442_v9 = vadd.f32 %v558_v8, %v480_v3  ;;  %v433_v10 = vpop.f32.mrb[7].mxu1 }
 0x1e4   :  { %445 = vst [vmem:[%s744_s5] sm:$0xff] %v431_v7  ;;  %v434_v11 = vadd.f32 %v480_v3, %v433_v10 }
 0x1e5   :  { %448 = vst [vmem:[%s744_s5 + $0x18] sm:$0xff] %v442_v9 }
 0x1e6   :  { %446 = vst [vmem:[%s744_s5 + $0x8] sm:$0xff] %v434_v11 }

</bundles_post_ra>
